<compile_context>
chip_gen: v6e
topology: v6e:2x2x1
jax: 0.10.0
libtpu: 0.0.40
codegen_flags: <defaults>
</compile_context>

<pallas_src>
import jax
import jax.numpy as jnp
from jax.experimental import pallas as pl
from jax.experimental.pallas import tpu as pltpu


def _make_kernel(n_cols, tile_c, num_inner, need_mask):
    def kernel(l1_ref, l2_ref, out_ref, acc_ref):
        c = pl.program_id(0)      # class-axis split (parallel across TCs on v7x)
        j = pl.program_id(1)      # class tile within the split (reduction axis)

        @pl.when(j == 0)
        def _init():
            acc_ref[...] = jnp.zeros_like(acc_ref)

        l1 = l1_ref[...].astype(jnp.float32)   # (N, tile_c); bf16 inputs also OK
        l2 = l2_ref[...].astype(jnp.float32)
        n_rows = l1.shape[0]                   # batchmean divisor (dim-0 extent)

        # Shifted logits + per-column exp-sums (softmax axis is axis 0).
        z1 = l1 - jnp.max(l1, axis=0, keepdims=True)
        e1 = jnp.exp(z1)
        s1 = jnp.sum(e1, axis=0, keepdims=True)            # (1, tile_c)
        z2 = l2 - jnp.max(l2, axis=0, keepdims=True)
        s2 = jnp.sum(jnp.exp(z2), axis=0, keepdims=True)    # (1, tile_c)

        # sum_rows(p1 * (ls1 - ls2)) per column, without materializing ls1/ls2:
        #   = sum_rows(e1 * (z1 - z2)) / s1 + log(s2) - log(s1)
        col = (jnp.sum(e1 * (z1 - z2), axis=0, keepdims=True) / s1
               + (jnp.log(s2) - jnp.log(s1)))               # (1, tile_c)

        if need_mask:
            # Partial last tile: zero out padded lanes (padded data is garbage).
            start = (c * num_inner + j) * tile_c
            lane = start + jax.lax.broadcasted_iota(jnp.int32, col.shape, 1)
            col = jnp.where(lane < n_cols, col, 0.0)

        # Lane-wise accumulation; no per-step cross-lane reduce.
        acc_ref[...] += col

        @pl.when(j == num_inner - 1)
        def _finalize():
            # One XLU cross-lane reduce + fold 0.5 * batchmean (1/N) scaling.
            total = jnp.sum(acc_ref[...]) * (0.5 / n_rows)
            out_ref[...] = total.reshape(1, 1, 1)

    return kernel


def _pick_tiling(N, C, itemsize, tile_c=None):
    """Returns (tile_c, n_splits, num_inner_tiles, vmem_limit_bytes)."""
    try:
        phys = int(pltpu.get_tpu_info().vmem_capacity_bytes)
    except Exception:
        phys = 64 * 1024 * 1024  # conservative: v7x has 64 MiB VMEM per TensorCore
    # Scoped VMEM we request: ~96 MiB on 128-MiB parts (v5e/v6e), ~40 MiB on v7x.
    vmem_limit = min(int(phys * 0.75), phys - 24 * 1024 * 1024)

    if tile_c is None:
        # Per-lane VMEM cost: 2 inputs x 2 DMA buffers at the input itemsize
        # plus ~5 live f32 (N, tile_c) temporaries in the kernel body, plus the
        # f32 accumulator lane. Target most of the scoped budget so each grid
        # step moves multi-MiB DMAs (amortizes the ~0.35us per-step overhead).
        per_lane = N * (4 * itemsize + 5 * 4) + 4
        budget = int(vmem_limit * 0.75)
        tile_c = max(128, (budget // per_lane) // 128 * 128)
        # TODO(synk): for very large N even a 128-lane full-N column block can
        # exceed VMEM (v7x's 64 MiB hits first); stream over N with an online
        # logsumexp carried in a (1, tile_c) scratch instead.

    if tile_c >= C:
        # Single block covering the full class dim (full-extent last dim is
        # always a legal block shape, so no masking needed).
        return C, 1, 1, vmem_limit

    assert tile_c % 128 == 0, "class tile must be a multiple of 128 lanes"
    n_tiles = -(-C // tile_c)
    # Even tile count -> split the class axis 2-way ("parallel" outer axis):
    # both TensorCores on v7x get half the reduction; harmless elsewhere.
    n_splits = 2 if n_tiles % 2 == 0 else 1
    return tile_c, n_splits, n_tiles // n_splits, vmem_limit


def jsloss(net_1_logits, net_2_logits, *, tile_c=None):
    assert net_1_logits.shape == net_2_logits.shape
    assert net_1_logits.ndim == 2
    N, C = net_1_logits.shape
    itemsize = jnp.dtype(net_1_logits.dtype).itemsize
    tile_c, n_splits, num_inner, vmem_limit = _pick_tiling(N, C, itemsize, tile_c)
    need_mask = (C % tile_c) != 0

    kernel = _make_kernel(C, tile_c, num_inner, need_mask)

    # TODO(synk): if a v7x profile still shows exposed input DMA after the
    # larger tiles, add pipeline_mode=pl.Buffered(3) to the two input specs
    # (only if the 3-deep working set still fits the ~40 MiB v7x budget).
    out = pl.pallas_call(
        kernel,
        out_shape=jax.ShapeDtypeStruct((n_splits, 1, 1), jnp.float32),
        grid=(n_splits, num_inner),
        in_specs=[
            pl.BlockSpec((N, tile_c), lambda c, j: (0, c * num_inner + j)),
            pl.BlockSpec((N, tile_c), lambda c, j: (0, c * num_inner + j)),
        ],
        out_specs=pl.BlockSpec((1, 1, 1), lambda c, j: (c, 0, 0)),
        scratch_shapes=[pltpu.VMEM((1, tile_c), jnp.float32)],
        compiler_params=pltpu.CompilerParams(
            # Outer split is independent (megacore-shardable); the class-tile
            # axis reduces into the per-split accumulator.
            dimension_semantics=("parallel", "arbitrary"),
            vmem_limit_bytes=int(vmem_limit),
        ),
    )(net_1_logits, net_2_logits)
    # Sum the (at most two) per-core partial losses.
    return jnp.sum(out)


def jsloss_ref(net_1_logits, net_2_logits):
    """Pure-JAX mirror of the PyTorch forward (kl1 kept, xlogy KL semantics)."""
    x1 = net_1_logits.astype(jnp.float32)
    x2 = net_2_logits.astype(jnp.float32)
    p1 = jax.nn.softmax(x1, axis=0)
    total_m = 0.5 * (p1 + p1)                 # module's kept bug: == p1
    ls1 = jax.nn.log_softmax(x1, axis=0)
    ls2 = jax.nn.log_softmax(x2, axis=0)
    n = x1.shape[0]

    def kl_div_batchmean(log_input, target):
        elt = jax.scipy.special.xlogy(target, target) - target * log_input
        return jnp.sum(elt) / n

    loss = kl_div_batchmean(ls1, total_m) + kl_div_batchmean(ls2, total_m)
    return 0.5 * loss


if __name__ == "__main__":
    key = jax.random.PRNGKey(0)
    k1, k2 = jax.random.split(key)

    # Auto-tiled path: batch N=8 (softmax/batchmean axis), classes C=1024.
    N, C = 8, 1024
    a = jax.random.normal(k1, (N, C), dtype=jnp.float32)
    b = jax.random.normal(k2, (N, C), dtype=jnp.float32)
    ref = jax.block_until_ready(jsloss_ref(a, b))
    out = jax.block_until_ready(jsloss(a, b))
    assert jnp.allclose(out, ref, rtol=2e-5, atol=1e-5), (out, ref)

    # Forced multi-tile path: 4 tiles -> 2-way split (dual-TensorCore path on
    # v7x) + lane-wise accumulator across the reduction axis.
    out_t = jax.block_until_ready(jsloss(a, b, tile_c=256))
    assert jnp.allclose(out_t, ref, rtol=2e-5, atol=1e-5), (out_t, ref)

    # Ragged class dim: last tile partially masked (1000 % 256 != 0).
    a2 = jax.random.normal(k1, (8, 1000), dtype=jnp.float32)
    b2 = jax.random.normal(k2, (8, 1000), dtype=jnp.float32)
    ref2 = jax.block_until_ready(jsloss_ref(a2, b2))
    out2 = jax.block_until_ready(jsloss(a2, b2, tile_c=256))
    assert jnp.allclose(out2, ref2, rtol=2e-5, atol=1e-5), (out2, ref2)

    # Odd tile count -> no split (grid (1, 3)), still masked ragged tail.
    out2b = jax.block_until_ready(jsloss(a2, b2, tile_c=384))
    assert jnp.allclose(out2b, ref2, rtol=2e-5, atol=1e-5), (out2b, ref2)

    # bf16 logits at the boundary (halves HBM traffic); math stays f32 in-kernel.
    a3 = a.astype(jnp.bfloat16)
    b3 = b.astype(jnp.bfloat16)
    ref3 = jax.block_until_ready(jsloss_ref(a3, b3))
    out3 = jax.block_until_ready(jsloss(a3, b3, tile_c=256))
    assert jnp.allclose(out3, ref3, rtol=1e-4, atol=1e-4), (out3, ref3)

    print("KERNEL_OK")
</pallas_src>

<mosaic_0001>
module attributes {stable_mosaic.version = 11 : i64} {
  func.func @kernel(%arg0: i32, %arg1: i32, %arg2: memref<8x1024xf32, #tpu.memory_space<vmem>>, %arg3: memref<8x1024xf32, #tpu.memory_space<vmem>>, %arg4: memref<1x1x1xf32, #tpu.memory_space<vmem>>, %arg5: memref<1x1024xf32, #tpu.memory_space<vmem>>) attributes {dimension_semantics = [#tpu.dimension_semantics<parallel>, #tpu.dimension_semantics<arbitrary>], iteration_bounds = array<i64: 1, 1>, scalar_prefetch = 0 : i64, scratch_operands = 1 : i64, tpu.core_type = #tpu.core_type<tc>, window_params = [{transform_indices = @transform_0, window_bounds = array<i64: 8, 1024>}, {transform_indices = @transform_1, window_bounds = array<i64: 8, 1024>}, {transform_indices = @transform_2, window_bounds = array<i64: 1, 1, 1>}]} {
    %c0_i32 = arith.constant 0 : i32
    %0 = arith.cmpi eq, %arg1, %c0_i32 : i32
    %1 = arith.extui %0 : i1 to i32
    %c0_i32_0 = arith.constant 0 : i32
    %2 = arith.cmpi ne, %1, %c0_i32_0 : i32
    scf.if %2 {
      %cst_14 = arith.constant 0.000000e+00 : f32
      %34 = vector.broadcast %cst_14 : f32 to vector<1x1024xf32>
      %c0_15 = arith.constant 0 : index
      %c0_16 = arith.constant 0 : index
      %35 = vector.load %arg5[%c0_15, %c0_16] : memref<1x1024xf32, #tpu.memory_space<vmem>>, vector<1x1024xf32>
      tpu.vector_store %arg5[%c0_15, %c0_16], %34 {strides = array<i32>} : memref<1x1024xf32, #tpu.memory_space<vmem>>, vector<1x1024xf32>,
    } else {
    }
    %c0 = arith.constant 0 : index
    %c0_1 = arith.constant 0 : index
    %3 = vector.load %arg2[%c0, %c0_1] : memref<8x1024xf32, #tpu.memory_space<vmem>>, vector<8x1024xf32>
    %c0_2 = arith.constant 0 : index
    %c0_3 = arith.constant 0 : index
    %4 = vector.load %arg3[%c0_2, %c0_3] : memref<8x1024xf32, #tpu.memory_space<vmem>>, vector<8x1024xf32>
    %cst = arith.constant dense<0xFF800000> : vector<1024xf32>
    %5 = vector.multi_reduction <maximumf>, %3, %cst [0] : vector<8x1024xf32> to vector<1024xf32>
    %6 = vector.shape_cast %5 : vector<1024xf32> to vector<1x1024xf32>
    %7 = vector.broadcast %6 : vector<1x1024xf32> to vector<8x1024xf32>
    %8 = arith.subf %3, %7 : vector<8x1024xf32>
    %9 = math.exp %8 : vector<8x1024xf32>
    %cst_4 = arith.constant dense<0.000000e+00> : vector<1024xf32>
    %10 = vector.multi_reduction <add>, %9, %cst_4 [0] : vector<8x1024xf32> to vector<1024xf32>
    %11 = vector.shape_cast %10 : vector<1024xf32> to vector<1x1024xf32>
    %cst_5 = arith.constant dense<0xFF800000> : vector<1024xf32>
    %12 = vector.multi_reduction <maximumf>, %4, %cst_5 [0] : vector<8x1024xf32> to vector<1024xf32>
    %13 = vector.shape_cast %12 : vector<1024xf32> to vector<1x1024xf32>
    %14 = vector.broadcast %13 : vector<1x1024xf32> to vector<8x1024xf32>
    %15 = arith.subf %4, %14 : vector<8x1024xf32>
    %16 = math.exp %15 : vector<8x1024xf32>
    %cst_6 = arith.constant dense<0.000000e+00> : vector<1024xf32>
    %17 = vector.multi_reduction <add>, %16, %cst_6 [0] : vector<8x1024xf32> to vector<1024xf32>
    %18 = vector.shape_cast %17 : vector<1024xf32> to vector<1x1024xf32>
    %19 = arith.subf %8, %15 : vector<8x1024xf32>
    %20 = arith.mulf %9, %19 : vector<8x1024xf32>
    %cst_7 = arith.constant dense<0.000000e+00> : vector<1024xf32>
    %21 = vector.multi_reduction <add>, %20, %cst_7 [0] : vector<8x1024xf32> to vector<1024xf32>
    %22 = vector.shape_cast %21 : vector<1024xf32> to vector<1x1024xf32>
    %23 = arith.divf %22, %11 : vector<1x1024xf32>
    %24 = math.log %18 : vector<1x1024xf32>
    %25 = math.log %11 : vector<1x1024xf32>
    %26 = arith.subf %24, %25 : vector<1x1024xf32>
    %27 = arith.addf %23, %26 : vector<1x1024xf32>
    %c0_8 = arith.constant 0 : index
    %c0_9 = arith.constant 0 : index
    %28 = vector.load %arg5[%c0_8, %c0_9] : memref<1x1024xf32, #tpu.memory_space<vmem>>, vector<1x1024xf32>
    %29 = arith.addf %28, %27 : vector<1x1024xf32>
    %c0_10 = arith.constant 0 : index
    %c0_11 = arith.constant 0 : index
    %30 = vector.load %arg5[%c0_10, %c0_11] : memref<1x1024xf32, #tpu.memory_space<vmem>>, vector<1x1024xf32>
    tpu.vector_store %arg5[%c0_10, %c0_11], %29 {strides = array<i32>} : memref<1x1024xf32, #tpu.memory_space<vmem>>, vector<1x1024xf32>,
    %c0_i32_12 = arith.constant 0 : i32
    %31 = arith.cmpi eq, %arg1, %c0_i32_12 : i32
    %32 = arith.extui %31 : i1 to i32
    %c0_i32_13 = arith.constant 0 : i32
    %33 = arith.cmpi ne, %32, %c0_i32_13 : i32
    scf.if %33 {
      %c0_14 = arith.constant 0 : index
      %c0_15 = arith.constant 0 : index
      %34 = vector.load %arg5[%c0_14, %c0_15] : memref<1x1024xf32, #tpu.memory_space<vmem>>, vector<1x1024xf32>
      %35 = vector.shape_cast %34 : vector<1x1024xf32> to vector<1x1x1024xf32>
      %cst_16 = arith.constant dense<0.000000e+00> : vector<1xf32>
      %36 = vector.multi_reduction <add>, %35, %cst_16 [1, 2] : vector<1x1x1024xf32> to vector<1xf32>
      %37 = vector.shape_cast %36 : vector<1xf32> to vector<1x1x1xf32>
      %38 = vector.extract %37[0, 0, 0] : f32 from vector<1x1x1xf32>
      %cst_17 = arith.constant 6.250000e-02 : f32
      %39 = arith.mulf %38, %cst_17 : f32
      %40 = vector.broadcast %39 : f32 to vector<1x1x1xf32>
      %c0_18 = arith.constant 0 : index
      %c0_19 = arith.constant 0 : index
      %c0_20 = arith.constant 0 : index
      %41 = vector.load %arg4[%c0_18, %c0_19, %c0_20] : memref<1x1x1xf32, #tpu.memory_space<vmem>>, vector<1x1x1xf32>
      tpu.vector_store %arg4[%c0_18, %c0_19, %c0_20], %40 {strides = array<i32>} : memref<1x1x1xf32, #tpu.memory_space<vmem>>, vector<1x1x1xf32>,
    } else {
    }
    return
  }
  func.func @transform_0(%arg0: i32, %arg1: i32) -> (i32, i32) {
    %c1_i32 = arith.constant 1 : i32
    %0 = arith.muli %arg0, %c1_i32 : i32
    %1 = arith.addi %0, %arg1 : i32
    %c0_i32 = arith.constant 0 : i32
    %c0_i32_0 = arith.constant 0 : i32
    return %c0_i32, %1 : i32, i32
  }
  func.func @transform_1(%arg0: i32, %arg1: i32) -> (i32, i32) {
    %c1_i32 = arith.constant 1 : i32
    %0 = arith.muli %arg0, %c1_i32 : i32
    %1 = arith.addi %0, %arg1 : i32
    %c0_i32 = arith.constant 0 : i32
    %c0_i32_0 = arith.constant 0 : i32
    return %c0_i32, %1 : i32, i32
  }
  func.func @transform_2(%arg0: i32, %arg1: i32) -> (i32, i32, i32) {
    %c0_i32 = arith.constant 0 : i32
    %c0_i32_0 = arith.constant 0 : i32
    %c0_i32_1 = arith.constant 0 : i32
    return %arg0, %c0_i32, %c0_i32_0 : i32, i32, i32
  }
}

</mosaic_0001>

<bundles_post_ra>
// kernel: tpu_custom_call.1
= control target key start
LH: loop header
LB: loop body
LE: loop exit
PB: predicated region body
PF: predicated region fallthrough
CT: control target
= control target key end

     0   :  { %7 = vsyncpa [#allocation4], 0  ;;  %s1008_s0 = inlined_call_operand.hbm [shape: f32[8,1024], index: 0, kind: input, shape index: {}]   ;;  %s1009_s1 = inlined_call_operand.hbm [shape: f32[8,1024], index: 1, kind: input, shape index: {}]   ;;  %s1010_s2 = inlined_call_operand.hbm [shape: f32[1,1,1], index: 2, kind: output, shape index: {}]  }
   0x1   :  { %8 = vsyncpa [#allocation7], 0 }
   0x2   :  { %9 = vsyncpa [#allocation5], 0  ;;  %s740_s9 = smov [#allocation3]   ;;  %s741_s11 = smov [#allocation6]  }
   0x3   :  { %s20_s10 = sshll.u32 %s740_s9, 4  ;;  %s34_s12 = sshll.u32 %s741_s11, 4  ;;  %s21_s10 = int_to_ptr.vmem [resolvable:$true] %s20_s10  ;;  %s35_s12 = int_to_ptr.vmem [resolvable:$true] %s34_s12 }
   0x4   :  { %s682_s13 = scalar_lea.vmem %s21_s10, 1024  ;;  %p687_p1 = scmp.lt.s32.totalorder %s21_s10, %s21_s10 }
   0x5   :  { %p683_p0 = scmp.ne.s32.totalorder %s21_s10, %s682_s13  ;;  %p688_p2 = scmp.lt.s32.totalorder %s682_s13, %s682_s13 }
   0x7   :  { %p689_p3 = por %p688_p2, %p687_p1 }
   0x9   :  { %p690_p4 = pnand %p689_p3, %p683_p0 }
   0xb   :  { %693 = shalt.err (!%p690_p4)
}
   0xc   :  { %23 = dma.hbm_to_vmem [thread:$0]  %s1008_s0, 1024, %s21_s10, [#allocation4]  }
   0xd   :  { %s702_s16 = scalar_lea.vmem %s35_s12, 1024  ;;  %p707_p6 = scmp.lt.s32.totalorder %s35_s12, %s35_s12 }
   0xe   :  { %p703_p5 = scmp.ne.s32.totalorder %s35_s12, %s702_s16  ;;  %p708_p7 = scmp.lt.s32.totalorder %s702_s16, %s702_s16 }
  0x10   :  { %p709_p8 = por %p708_p7, %p707_p6 }
  0x12   :  { %p710_p9 = pnand %p709_p8, %p703_p5 }
  0x14   :  { %713 = shalt.err (!%p710_p9)
}
  0x15   :  { %37 = dma.hbm_to_vmem [thread:$0]  %s1009_s1, 1024, %s35_s12, [#allocation7]  }
  0x16   :  { %734 = dma.done.wait [#allocation4], 1024  }
  0x17   :  { %735 = vsyncadd [#allocation4], 4294966272 }
  0x18   :  { %736 = dma.done.wait [#allocation7], 1024  }
  0x19   :  { %737 = vsyncadd [#allocation7], 4294966272  ;;  %v53_v0 = vld [vmem:[#allocation3] sm:$0xff]  ;;  %v54_v1 = vld [vmem:[#allocation3 + $0x8] sm:$0xff]  ;;  %vm543_vm0 = vcmask 1040384   ;;  %s743_s0 = smov [#allocation8]  }
  0x1a   :  { %v765_v2 = vld [vmem:[#allocation3 + $0x10] sm:$0xff]  ;;  %v767_v3 = vld [vmem:[#allocation3 + $0x18] sm:$0xff]  ;;  %v769_v4 = vld [vmem:[#allocation3 + $0x20] sm:$0xff]  ;;  %v69_v6 = vrot.slane %v53_v0, 4  ;;  %v75_v7 = vrot.slane %v54_v1, 4  ;;  %s578_s1 = sshll.u32 %s743_s0, 4  ;;  %s579_s1 = int_to_ptr.vmem [resolvable:$true] %s578_s1 }
  0x1b   :  { %v771_v5 = vld [vmem:[#allocation3 + $0x28] sm:$0xff]  ;;  %v81_v8 = vrot.slane %v765_v2, 4  ;;  %v774_v9 = vld [vmem:[#allocation3 + $0x30] sm:$0xff]  ;;  %v776_v10 = vld [vmem:[#allocation3 + $0x38] sm:$0xff]  ;;  %v87_v11 = vrot.slane %v767_v3, 4  ;;  %v93_v12 = vrot.slane %v769_v4, 4  ;;  %p719_p11 = scmp.lt.s32.totalorder %s579_s1, %s579_s1 }
  0x1c   :  { %v99_v13 = vrot.slane %v771_v5, 4  ;;  %v70_v14 = vmax.f32 %v53_v0, %v69_v6  ;;  %v76_v15 = vmax.f32 %v54_v1, %v75_v7  ;;  %v105_v17 = vrot.slane %v774_v9, 4  ;;  %v789_v49 = vld [vmem:[#allocation6] sm:$0xff]  ;;  %v791_v50 = vld [vmem:[#allocation6 + $0x8] sm:$0xff]  ;;  %v793_v53 = vld [vmem:[#allocation6 + $0x10] sm:$0xff]  ;;  %s714_s21 = scalar_lea.vmem %s579_s1, 16 }
  0x1d   :  { %v82_v16 = vmax.f32 %v765_v2, %v81_v8  ;;  %v88_v18 = vmax.f32 %v767_v3, %v87_v11  ;;  %v94_v19 = vmax.f32 %v769_v4, %v93_v12  ;;  %v111_v21 = vrot.slane %v776_v10, 4  ;;  %v795_v54 = vld [vmem:[#allocation6 + $0x18] sm:$0xff]  ;;  %v797_v56 = vld [vmem:[#allocation6 + $0x20] sm:$0xff]  ;;  %v801_v60 = vld [vmem:[#allocation6 + $0x28] sm:$0xff]  ;;  %p715_p10 = scmp.ne.s32.totalorder %s579_s1, %s714_s21  ;;  %s718_s22 = scalar_lea.vmem %s579_s1, 32 }
  0x1e   :  { %v100_v20 = vmax.f32 %v771_v5, %v99_v13  ;;  %v71_v22 = vrot.slane %v70_v14, 2  ;;  %v77_v23 = vrot.slane %v76_v15, 2  ;;  %v106_v25 = vmax.f32 %v774_v9, %v105_v17  ;;  %p720_p12 = scmp.lt.s32.totalorder %s718_s22, %s714_s21 }
  0x1f   :  { %v83_v24 = vrot.slane %v82_v16, 2  ;;  %v89_v26 = vrot.slane %v88_v18, 2  ;;  %v95_v27 = vrot.slane %v94_v19, 2  ;;  %v112_v29 = vmax.f32 %v776_v10, %v111_v21  ;;  %v828_v21 = vld [vmem:[#allocation6 + $0x30] sm:$0xff] }
  0x20   :  { %v101_v28 = vrot.slane %v100_v20, 2  ;;  %v72_v30 = vmax.f32 %v70_v14, %v71_v22  ;;  %v78_v31 = vmax.f32 %v76_v15, %v77_v23  ;;  %v107_v33 = vrot.slane %v106_v25, 2  ;;  %p721_p13 = por %p720_p12, %p719_p11 }
  0x21   :  { %v84_v32 = vmax.f32 %v82_v16, %v83_v24  ;;  %v90_v34 = vmax.f32 %v88_v18, %v89_v26  ;;  %v96_v35 = vmax.f32 %v94_v19, %v95_v27  ;;  %v113_v37 = vrot.slane %v112_v29, 2 }
  0x22   :  { %v102_v36 = vmax.f32 %v100_v20, %v101_v28  ;;  %v73_v38 = vrot.slane %v72_v30, 1  ;;  %v79_v39 = vrot.slane %v78_v31, 1  ;;  %v108_v40 = vmax.f32 %v106_v25, %v107_v33  ;;  %p722_p0 = pnand %p721_p13, %p715_p10 }
  0x23   :  { %v85_v41 = vrot.slane %v84_v32, 1  ;;  %v114_v42 = vmax.f32 %v112_v29, %v113_v37  ;;  %v91_v43 = vrot.slane %v90_v34, 1  ;;  %v97_v45 = vrot.slane %v96_v35, 1 }
  0x24   :  { %v74_v44 = vmax.f32 %v72_v30, %v73_v38  ;;  %v103_v46 = vrot.slane %v102_v36, 1  ;;  %v80_v47 = vmax.f32 %v78_v31, %v79_v39  ;;  %v109_v48 = vrot.slane %v108_v40, 1 }
  0x25   :  { %v86_v51 = vmax.f32 %v84_v32, %v85_v41  ;;  %v115_v52 = vrot.slane %v114_v42, 1  ;;  %v92_v55 = vmax.f32 %v90_v34, %v91_v43  ;;  %v98_v57 = vmax.f32 %v96_v35, %v97_v45 }
  0x26   :  { %v104_v58 = vmax.f32 %v102_v36, %v103_v46  ;;  %v799_v59 = vsub.f32 %v53_v0, %v74_v44  ;;  %v110_v61 = vmax.f32 %v108_v40, %v109_v48  ;;  %v803_v62 = vsub.f32 %v54_v1, %v80_v47 }
  0x27   :  { %v189_v63 = vrot.slane %v789_v49, 4  ;;  %v195_v6 = vrot.slane %v791_v50, 4  ;;  %v116_v7 = vmax.f32 %v114_v42, %v115_v52  ;;  %v808_v8 = vsub.f32 %v765_v2, %v86_v51 }
  0x28   :  { %v201_v11 = vrot.slane %v793_v53, 4  ;;  %v207_v12 = vrot.slane %v795_v54, 4  ;;  %v813_v0 = vsub.f32 %v767_v3, %v92_v55  ;;  %v213_v14 = vrot.slane %v797_v56, 4 }
  0x29   :  { %v190_v13 = vmax.f32 %v789_v49, %v189_v63  ;;  %v196_v1 = vmax.f32 %v791_v50, %v195_v6  ;;  %v819_v15 = vsub.f32 %v769_v4, %v98_v57  ;;  %v822_v16 = vsub.f32 %v771_v5, %v104_v58  ;;  %v833_v5 = vld [vmem:[#allocation6 + $0x38] sm:$0xff] }
  0x2a   :  { %v125_v2 = vmul.f32 1.442695, %v799_v59  ;;  %v219_v17 = vrot.slane %v801_v60, 4  ;;  %v202_v3 = vmax.f32 %v793_v53, %v201_v11  ;;  %v208_v20 = vmax.f32 %v795_v54, %v207_v12 }
  0x2b   :  { %v191_v18 = vrot.slane %v190_v13, 2  ;;  %v197_v19 = vrot.slane %v196_v1, 2  ;;  %v127_v22 = vmul.f32 1.442695, %v803_v62  ;;  %v214_v4 = vmax.f32 %v797_v56, %v213_v14 }
  0x2c   :  { %v220_v23 = vmax.f32 %v801_v60, %v219_v17  ;;  %v836_v24 = vsub.f32 %v774_v9, %v110_v61  ;;  %v839_v25 = vsub.f32 %v776_v10, %v116_v7  ;;  %v129_v26 = vmul.f32 1.442695, %v808_v8 }
  0x2d   :  { %v192_v27 = vmax.f32 %v190_v13, %v191_v18  ;;  %v131_v28 = vmul.f32 1.442695, %v813_v0  ;;  %v133_v29 = vmul.f32 1.442695, %v819_v15  ;;  %v135_v30 = vmul.f32 1.442695, %v822_v16 }
  0x2e   :  { %v198_v31 = vmax.f32 %v196_v1, %v197_v19  ;;  %594 = vpow2.f32 %v125_v2  ;;  %v203_v32 = vrot.slane %v202_v3, 2  ;;  %v209_v33 = vrot.slane %v208_v20, 2 }
  0x2f   :  { %v225_v34 = vrot.slane %v828_v21, 4  ;;  %596 = vpow2.f32 %v127_v22  ;;  %v215_v9 = vrot.slane %v214_v4, 2  ;;  %v221_v35 = vrot.slane %v220_v23, 2 }
  0x30   :  { %v231_v10 = vrot.slane %v833_v5, 4  ;;  %598 = vpow2.f32 %v129_v26  ;;  %v137_v36 = vmul.f32 1.442695, %v836_v24  ;;  %v193_v37 = vrot.slane %v192_v27, 1 }
  0x31   :  { %v226_v38 = vmax.f32 %v828_v21, %v225_v34  ;;  %600 = vpow2.f32 %v131_v28  ;;  %v139_v39 = vmul.f32 1.442695, %v839_v25  ;;  %v199_v40 = vrot.slane %v198_v31, 1 }
  0x32   :  { %v232_v41 = vmax.f32 %v833_v5, %v231_v10  ;;  %602 = vpow2.f32 %v133_v29  ;;  %v204_v42 = vmax.f32 %v202_v3, %v203_v32  ;;  %v210_v43 = vmax.f32 %v208_v20, %v209_v33 }
  0x33   :  { %v227_v44 = vrot.slane %v226_v38, 2  ;;  %604 = vpow2.f32 %v135_v30  ;;  %v216_v45 = vmax.f32 %v214_v4, %v215_v9  ;;  %v222_v46 = vmax.f32 %v220_v23, %v221_v35 }
  0x34   :  { %v233_v47 = vrot.slane %v232_v41, 2  ;;  %606 = vpow2.f32 %v137_v36  ;;  %v194_v48 = vmax.f32 %v192_v27, %v193_v37  ;;  %v200_v52 = vmax.f32 %v198_v31, %v199_v40 }
  0x35   :  { %v228_v51 = vmax.f32 %v226_v38, %v227_v44  ;;  %608 = vpow2.f32 %v139_v39  ;;  %v205_v57 = vrot.slane %v204_v42, 1  ;;  %v211_v58 = vrot.slane %v210_v43, 1 }
  0x36   :  { %v234_v55 = vmax.f32 %v232_v41, %v233_v47  ;;  %v217_v61 = vrot.slane %v216_v45, 1  ;;  %v223_v63 = vrot.slane %v222_v46, 1  ;;  %v852_v7 = vsub.f32 %v789_v49, %v194_v48 }
  0x37   :  { %v229_v6 = vrot.slane %v228_v51, 1  ;;  %v855_v12 = vsub.f32 %v791_v50, %v200_v52  ;;  %v206_v13 = vmax.f32 %v204_v42, %v205_v57  ;;  %v212_v1 = vmax.f32 %v210_v43, %v211_v58 }
  0x38   :  { %v235_v11 = vrot.slane %v234_v55, 1  ;;  %v218_v2 = vmax.f32 %v216_v45, %v217_v61  ;;  %v224_v17 = vmax.f32 %v222_v46, %v223_v63  ;;  %v245_v3 = vmul.f32 1.442695, %v852_v7 }
  0x39   :  { %v230_v19 = vmax.f32 %v228_v51, %v229_v6  ;;  %v247_v49 = vmul.f32 1.442695, %v855_v12  ;;  %v868_v50 = vsub.f32 %v793_v53, %v206_v13  ;;  %v871_v23 = vsub.f32 %v795_v54, %v212_v1 }
  0x3a   :  { %v236_v22 = vmax.f32 %v234_v55, %v235_v11  ;;  %v876_v27 = vsub.f32 %v797_v56, %v218_v2  ;;  %v879_v28 = vsub.f32 %v801_v60, %v224_v17  ;;  %610 = vpow2.f32 %v245_v3 }
  0x3b   :  { %v857_v14 = vpop.eup %594  ;;  %v884_v30 = vsub.f32 %v828_v21, %v230_v19  ;;  %612 = vpow2.f32 %v247_v49  ;;  %v249_v33 = vmul.f32 1.442695, %v868_v50  ;;  %v251_v21 = vmul.f32 1.442695, %v871_v23 }
  0x3c   :  { %v859_v18 = vpop.eup %596  ;;  %v141_v53 = vrot.slane %v857_v14, 4  ;;  %v890_v54 = vsub.f32 %v833_v5, %v236_v22  ;;  %v253_v35 = vmul.f32 1.442695, %v876_v27  ;;  %v255_v5 = vmul.f32 1.442695, %v879_v28 }
  0x3d   :  { %v862_v20 = vpop.eup %598  ;;  %v147_v56 = vrot.slane %v859_v18, 4  ;;  %614 = vpow2.f32 %v249_v33  ;;  %v257_v37 = vmul.f32 1.442695, %v884_v30  ;;  %vm570_vm1 = vcmask 0  }
  0x3e   :  { %v865_v4 = vpop.eup %600  ;;  %v153_v60 = vrot.slane %v862_v20, 4  ;;  %v142_v38 = vadd.f32 %v857_v14, %v141_v53  ;;  %616 = vpow2.f32 %v251_v21  ;;  %v259_v40 = vmul.f32 1.442695, %v890_v54 }
  0x3f   :  { %v873_v26 = vpop.eup %602  ;;  %v159_v34 = vrot.slane %v865_v4, 4  ;;  %v148_v41 = vadd.f32 %v859_v18, %v147_v56  ;;  %618 = vpow2.f32 %v253_v35 }
  0x40   :  { %v881_v29 = vpop.eup %604  ;;  %v165_v9 = vrot.slane %v873_v26, 4  ;;  %v154_v42 = vadd.f32 %v862_v20, %v153_v60  ;;  %620 = vpow2.f32 %v255_v5  ;;  %v143_v47 = vrot.slane %v142_v38, 2 }
  0x41   :  { %v886_v31 = vpop.eup %606  ;;  %v171_v10 = vrot.slane %v881_v29, 4  ;;  %v160_v43 = vadd.f32 %v865_v4, %v159_v34  ;;  %622 = vpow2.f32 %v257_v37  ;;  %v149_v51 = vrot.slane %v148_v41, 2 }
  0x42   :  { %v892_v32 = vpop.eup %608  ;;  %v177_v36 = vrot.slane %v886_v31, 4  ;;  %v166_v44 = vadd.f32 %v873_v26, %v165_v9  ;;  %624 = vpow2.f32 %v259_v40  ;;  %v155_v52 = vrot.slane %v154_v42, 2 }
  0x43   :  { %v183_v39 = vrot.slane %v892_v32, 4  ;;  %v172_v45 = vadd.f32 %v881_v29, %v171_v10  ;;  %v161_v55 = vrot.slane %v160_v43, 2  ;;  %v144_v6 = vadd.f32 %v143_v47, %v142_v38 }
  0x44   :  { %v178_v46 = vadd.f32 %v886_v31, %v177_v36  ;;  %v167_v57 = vrot.slane %v166_v44, 2  ;;  %v150_v1 = vadd.f32 %v149_v51, %v148_v41  ;;  %v156_v2 = vadd.f32 %v155_v52, %v154_v42 }
  0x45   :  { %v184_v48 = vadd.f32 %v892_v32, %v183_v39  ;;  %v173_v58 = vrot.slane %v172_v45, 2  ;;  %v162_v17 = vadd.f32 %v161_v55, %v160_v43  ;;  %v145_v56 = vrot.slane %v144_v6, 1 }
  0x46   :  { %v179_v61 = vrot.slane %v178_v46, 2  ;;  %v168_v19 = vadd.f32 %v167_v57, %v166_v44  ;;  %v151_v34 = vrot.slane %v150_v1, 1  ;;  %v157_v9 = vrot.slane %v156_v2, 1 }
  0x47   :  { %v611_v63 = vpop.eup %610  ;;  %v185_v11 = vrot.slane %v184_v48, 2  ;;  %v174_v3 = vadd.f32 %v173_v58, %v172_v45  ;;  %v163_v10 = vrot.slane %v162_v17, 1  ;;  %v915_v44 = vadd.f32 %v145_v56, %v144_v6 }
  0x48   :  { %v613_v13 = vpop.eup %612  ;;  %v180_v22 = vadd.f32 %v179_v61, %v178_v46  ;;  %v261_v49 = vrot.slane %v611_v63, 4  ;;  %v169_v36 = vrot.slane %v168_v19, 1  ;;  %v917_v51 = vadd.f32 %v151_v34, %v150_v1 }
  0x49   :  { %v186_v60 = vadd.f32 %v185_v11, %v184_v48  ;;  %v267_v33 = vrot.slane %v613_v13, 4  ;;  %v175_v39 = vrot.slane %v174_v3, 1  ;;  %v919_v52 = vadd.f32 %v157_v9, %v156_v2 }
  0x4a   :  { %v615_v53 = vpop.eup %614  ;;  %v181_v40 = vrot.slane %v180_v22, 1  ;;  %v262_v41 = vadd.f32 %v611_v63, %v261_v49  ;;  %v921_v58 = vadd.f32 %v163_v10, %v162_v17  ;;  %v923_v61 = vadd.f32 %v169_v36, %v168_v19 }
  0x4b   :  { %v617_v21 = vpop.eup %616  ;;  %v273_v35 = vrot.slane %v615_v53, 4  ;;  %v187_v45 = vrot.slane %v186_v60, 1  ;;  %v268_v46 = vadd.f32 %v613_v13, %v267_v33  ;;  %v925_v49 = vadd.f32 %v175_v39, %v174_v3 }
  0x4c   :  { %v619_v5 = vpop.eup %618  ;;  %v279_v37 = vrot.slane %v617_v21, 4  ;;  %v927_v6 = vadd.f32 %v181_v40, %v180_v22  ;;  %v263_v56 = vrot.slane %v262_v41, 2  ;;  %v309_v2 = vsub.f32 %v799_v59, %v852_v7 }
  0x4d   :  { %v621_v38 = vpop.eup %620  ;;  %v285_v42 = vrot.slane %v619_v5, 4  ;;  %v274_v55 = vadd.f32 %v615_v53, %v273_v35  ;;  %v929_v33 = vadd.f32 %v187_v45, %v186_v60  ;;  %v269_v1 = vrot.slane %v268_v46, 2 }
  0x4e   :  { %v623_v43 = vpop.eup %622  ;;  %v291_v47 = vrot.slane %v621_v38, 4  ;;  %v280_v11 = vadd.f32 %v617_v21, %v279_v37  ;;  %v310_v19 = vsub.f32 %v803_v62, %v855_v12  ;;  %v311_v3 = vsub.f32 %v808_v8, %v868_v50 }
  0x4f   :  { %v625_v48 = vpop.eup %624  ;;  %v297_v57 = vrot.slane %v623_v43, 4  ;;  %v286_v13 = vadd.f32 %v619_v5, %v285_v42  ;;  %v275_v53 = vrot.slane %v274_v55, 2  ;;  %v312_v9 = vsub.f32 %v813_v0, %v871_v23 }
  0x50   :  { %v303_v63 = vrot.slane %v625_v48, 4  ;;  %v292_v34 = vadd.f32 %v621_v38, %v291_v47  ;;  %v281_v21 = vrot.slane %v280_v11, 2  ;;  %v313_v60 = vsub.f32 %v819_v15, %v876_v27 }
  0x51   :  { %v298_v17 = vadd.f32 %v623_v43, %v297_v57  ;;  %v264_v35 = vadd.f32 %v263_v56, %v262_v41  ;;  %v287_v5 = vrot.slane %v286_v13, 2  ;;  %v314_v59 = vsub.f32 %v822_v16, %v879_v28 }
  0x52   :  { %v304_v22 = vadd.f32 %v625_v48, %v303_v63  ;;  %v315_v7 = vsub.f32 %v836_v24, %v884_v30  ;;  %v270_v62 = vadd.f32 %v269_v1, %v268_v46  ;;  %v293_v12 = vrot.slane %v292_v34, 2 }
  0x53   :  { %v316_v8 = vsub.f32 %v839_v25, %v890_v54  ;;  %v317_v50 = vmul.f32 %v857_v14, %v309_v2  ;;  %v276_v10 = vadd.f32 %v275_v53, %v274_v55  ;;  %v299_v0 = vrot.slane %v298_v17, 2 }
  0x54   :  { %v318_v23 = vmul.f32 %v859_v18, %v310_v19  ;;  %v319_v15 = vmul.f32 %v862_v20, %v311_v3  ;;  %v282_v27 = vadd.f32 %v281_v21, %v280_v11  ;;  %v305_v36 = vrot.slane %v304_v22, 2 }
  0x55   :  { %v320_v16 = vmul.f32 %v865_v4, %v312_v9  ;;  %v321_v28 = vmul.f32 %v873_v26, %v313_v60  ;;  %v265_v24 = vrot.slane %v264_v35, 1  ;;  %v288_v30 = vadd.f32 %v287_v5, %v286_v13 }
  0x56   :  { %v322_v37 = vmul.f32 %v881_v29, %v314_v59  ;;  %626 = vrcp.f32 %v915_v44  ;;  %v271_v25 = vrot.slane %v270_v62, 1  ;;  %v294_v14 = vadd.f32 %v293_v12, %v292_v34 }
  0x57   :  { %v323_v54 = vmul.f32 %v886_v31, %v315_v7  ;;  %628 = vrcp.f32 %v917_v51  ;;  %v277_v18 = vrot.slane %v276_v10, 1  ;;  %v300_v20 = vadd.f32 %v299_v0, %v298_v17 }
  0x58   :  { %v324_v38 = vmul.f32 %v892_v32, %v316_v8  ;;  %630 = vrcp.f32 %v919_v52  ;;  %v283_v4 = vrot.slane %v282_v27, 1  ;;  %v306_v26 = vadd.f32 %v305_v36, %v304_v22 }
  0x59   :  { %v325_v39 = vrot.slane %v317_v50, 4  ;;  %632 = vrcp.f32 %v921_v58  ;;  %v266_v29 = vadd.f32 %v265_v24, %v264_v35  ;;  %v289_v40 = vrot.slane %v288_v30, 1 }
  0x5a   :  { %v331_v41 = vrot.slane %v318_v23, 4  ;;  %634 = vrcp.f32 %v923_v61  ;;  %v272_v42 = vadd.f32 %v271_v25, %v270_v62  ;;  %v295_v31 = vrot.slane %v294_v14, 1 }
  0x5b   :  { %v337_v43 = vrot.slane %v319_v15, 4  ;;  %636 = vrcp.f32 %v925_v49  ;;  %v278_v45 = vadd.f32 %v277_v18, %v276_v10  ;;  %v301_v46 = vrot.slane %v300_v20, 1 }
  0x5c   :  { %v343_v32 = vrot.slane %v320_v16, 4  ;;  %638 = vrcp.f32 %v927_v6  ;;  %v284_v47 = vadd.f32 %v283_v4, %v282_v27  ;;  %v307_v48 = vrot.slane %v306_v26, 1 }
  0x5d   :  { %v349_v55 = vrot.slane %v321_v28, 4  ;;  %640 = vrcp.f32 %v929_v33  ;;  %v290_v57 = vadd.f32 %v289_v40, %v288_v30  ;;  %v326_v11 = vadd.f32 %v325_v39, %v317_v50 }
  0x5e   :  { %v355_v63 = vrot.slane %v322_v37, 4  ;;  %642 = vlog2.f32 %v266_v29  ;;  %v296_v56 = vadd.f32 %v295_v31, %v294_v14  ;;  %v361_v13 = vrot.slane %v323_v54, 4 }
  0x5f   :  { %v367_v1 = vrot.slane %v324_v38, 4  ;;  %644 = vlog2.f32 %v272_v42  ;;  %v302_v34 = vadd.f32 %v301_v46, %v300_v20  ;;  %v332_v2 = vadd.f32 %v331_v41, %v318_v23 }
  0x60   :  { %v338_v53 = vadd.f32 %v337_v43, %v319_v15  ;;  %646 = vlog2.f32 %v278_v45  ;;  %v308_v17 = vadd.f32 %v307_v48, %v306_v26  ;;  %v344_v19 = vadd.f32 %v343_v32, %v320_v16 }
  0x61   :  { %v350_v3 = vadd.f32 %v349_v55, %v321_v28  ;;  %648 = vlog2.f32 %v284_v47  ;;  %v356_v21 = vadd.f32 %v355_v63, %v322_v37  ;;  %v327_v9 = vrot.slane %v326_v11, 2 }
  0x62   :  { %650 = vlog2.f32 %v290_v57  ;;  %v362_v60 = vadd.f32 %v361_v13, %v323_v54  ;;  %v368_v35 = vadd.f32 %v367_v1, %v324_v38  ;;  %v333_v59 = vrot.slane %v332_v2, 2 }
  0x63   :  { %v963_v22 = vpop.eup %626  ;;  %652 = vlog2.f32 %v296_v56  ;;  %v339_v7 = vrot.slane %v338_v53, 2  ;;  %v345_v12 = vrot.slane %v344_v19, 2  ;;  %v351_v8 = vrot.slane %v350_v3, 2 }
  0x64   :  { %v965_v5 = vpop.eup %628  ;;  %654 = vlog2.f32 %v302_v34  ;;  %v357_v10 = vrot.slane %v356_v21, 2  ;;  %v328_v23 = vadd.f32 %v327_v9, %v326_v11  ;;  %v363_v15 = vrot.slane %v362_v60, 2 }
  0x65   :  { %v967_v62 = vpop.eup %630  ;;  %656 = vlog2.f32 %v308_v17  ;;  %v369_v27 = vrot.slane %v368_v35, 2  ;;  %v334_v16 = vadd.f32 %v333_v59, %v332_v2  ;;  %v340_v28 = vadd.f32 %v339_v7, %v338_v53 }
  0x66   :  { %v969_v50 = vpop.eup %632  ;;  %658 = vlog2.f32 %v915_v44  ;;  %v346_v30 = vadd.f32 %v345_v12, %v344_v19  ;;  %v352_v37 = vadd.f32 %v351_v8, %v350_v3  ;;  %v358_v14 = vadd.f32 %v357_v10, %v356_v21 }
  0x67   :  { %v635_v0 = vpop.eup %634  ;;  %660 = vlog2.f32 %v917_v51  ;;  %v742_v44 = vmov 1966171168   ;;  %v453_v18 = vlaneseq  ;;  %v329_v51 = vrot.slane %v328_v23, 1 }
  0x68   :  { %v637_v36 = vpop.eup %636  ;;  %662 = vlog2.f32 %v919_v52  ;;  %v451_v54 = vunpack.c.l.s4 %v742_v44  ;;  %v364_v38 = vadd.f32 %v363_v15, %v362_v60  ;;  %v370_v4 = vadd.f32 %v369_v27, %v368_v35 }
  0x69   :  { %v639_v24 = vpop.eup %638  ;;  %664 = vlog2.f32 %v921_v58  ;;  %v335_v26 = vrot.slane %v334_v16, 1  ;;  %v341_v39 = vrot.slane %v340_v28, 1  ;;  %v347_v29 = vrot.slane %v346_v30, 1 }
  0x6a   :  { %v975_v25 = vpop.eup %640  ;;  %666 = vlog2.f32 %v923_v61  ;;  %v353_v40 = vrot.slane %v352_v37, 1  ;;  %v359_v41 = vrot.slane %v358_v14, 1  ;;  %v452_v42 = vunpack.c.0.s8 %v451_v54 }
  0x6b   :  { %v643_v20 = vpop.eup %642  ;;  %668 = vlog2.f32 %v925_v49  ;;  %v981_v31 = vshrl.u32 %v453_v18, 7  ;;  %v330_v45 = vadd.f32 %v329_v51, %v328_v23  ;;  %v365_v46 = vrot.slane %v364_v38, 1 }
  0x6c   :  { %v645_v52 = vpop.eup %644  ;;  %670 = vlog2.f32 %v927_v6  ;;  %v371_v32 = vrot.slane %v370_v4, 1  ;;  %v336_v47 = vadd.f32 %v335_v26, %v334_v16  ;;  %v342_v48 = vadd.f32 %v341_v39, %v340_v28 }
  0x6d   :  { %v647_v58 = vpop.eup %646  ;;  %672 = vlog2.f32 %v929_v33  ;;  %v348_v57 = vadd.f32 %v347_v29, %v346_v30  ;;  %v354_v6 = vadd.f32 %v353_v40, %v352_v37  ;;  %v360_v63 = vadd.f32 %v359_v41, %v358_v14 }
  0x6e   :  { %v649_v61 = vpop.eup %648  ;;  %v390_v56 = vmul.f32 0.6931472, %v643_v20  ;;  %v455_v33 = vsub.s32 %v452_v42, %v981_v31  ;;  %v366_v1 = vadd.f32 %v365_v46, %v364_v38  ;;  %v372_v34 = vadd.f32 %v371_v32, %v370_v4 }
  0x6f   :  { %v651_v43 = vpop.eup %650  ;;  %v374_v2 = vmul.f32 %v963_v22, %v330_v45  ;;  %v392_v53 = vmul.f32 0.6931472, %v645_v52  ;;  %v376_v19 = vmul.f32 %v965_v5, %v336_v47  ;;  %v378_v3 = vmul.f32 %v967_v62, %v342_v48 }
  0x70   :  { %v653_v49 = vpop.eup %652  ;;  %v394_v21 = vmul.f32 0.6931472, %v647_v58  ;;  %v380_v35 = vmul.f32 %v969_v50, %v348_v57  ;;  %v382_v59 = vmul.f32 %v635_v0, %v354_v6  ;;  %v396_v7 = vmul.f32 0.6931472, %v649_v61 }
  0x71   :  { %v655_v55 = vpop.eup %654  ;;  %v384_v10 = vmul.f32 %v637_v36, %v360_v63  ;;  %v398_v23 = vmul.f32 0.6931472, %v651_v43  ;;  %v386_v16 = vmul.f32 %v639_v24, %v366_v1  ;;  %v400_v28 = vmul.f32 0.6931472, %v653_v49 }
  0x72   :  { %v657_v11 = vpop.eup %656  ;;  %v402_v62 = vmul.f32 0.6931472, %v655_v55  ;;  %v388_v36 = vmul.f32 %v975_v25, %v372_v34  ;;  %v505_v63 = vsub.s32 0, %v981_v31  ;;  %v513_v1 = vsub.s32 2, %v981_v31 }
  0x73   :  { %v659_v13 = vpop.eup %658  ;;  %v404_v50 = vmul.f32 0.6931472, %v657_v11  ;;  %v517_v34 = vsub.s32 3, %v981_v31 }
  0x74   :  { %v661_v17 = vpop.eup %660  ;;  %v406_v9 = vmul.f32 0.6931472, %v659_v13  ;;  %v509_v13 = vsub.s32 1, %v981_v31 }
  0x75   :  { %v663_v60 = vpop.eup %662  ;;  %v408_v12 = vmul.f32 0.6931472, %v661_v17  ;;  %v525_v17 = vsub.s32 5, %v981_v31 }
  0x76   :  { %v665_v8 = vpop.eup %664  ;;  %v410_v15 = vmul.f32 0.6931472, %v663_v60  ;;  %v421_v27 = vsub.f32 %v390_v56, %v406_v9  ;;  %v529_v60 = vsub.s32 6, %v981_v31 }
  0x77   :  { %v667_v22 = vpop.eup %666  ;;  %v412_v30 = vmul.f32 0.6931472, %v665_v8  ;;  %v422_v5 = vsub.f32 %v392_v53, %v408_v12  ;;  %v521_v53 = vsub.s32 4, %v981_v31 }
  0x78   :  { %v669_v37 = vpop.eup %668  ;;  %v414_v14 = vmul.f32 0.6931472, %v667_v22  ;;  %v423_v44 = vsub.f32 %v394_v21, %v410_v15  ;;  %v429_v54 = vadd.f32 %v421_v27, %v374_v2 }
  0x79   :  { %v671_v18 = vpop.eup %670  ;;  %v416_v0 = vmul.f32 0.6931472, %v669_v37  ;;  %v424_v20 = vsub.f32 %v396_v7, %v412_v30  ;;  %v430_v51 = vadd.f32 %v422_v5, %v376_v19 }
  0x7a   :  { %v673_v38 = vpop.eup %672  ;;  %v418_v4 = vmul.f32 0.6931472, %v671_v18  ;;  %v425_v52 = vsub.f32 %v398_v23, %v414_v14  ;;  %v431_v26 = vadd.f32 %v423_v44, %v378_v3 }
  0x7b   :  { %v420_v24 = vmul.f32 0.6931472, %v673_v38  ;;  %v426_v39 = vsub.f32 %v400_v28, %v416_v0  ;;  %v432_v58 = vadd.f32 %v424_v20, %v380_v35  ;;  %v446_v29 = vcombine.low %v429_v54, %v430_v51 }
  0x7c   :  { %v427_v40 = vsub.f32 %v402_v62, %v418_v4  ;;  %v433_v61 = vadd.f32 %v425_v52, %v382_v59 }
  0x7d   :  { %v428_v41 = vsub.f32 %v404_v50, %v420_v24  ;;  %v434_v42 = vadd.f32 %v426_v39, %v384_v10  ;;  %v447_v43 = vcombine.low %v431_v26, %v432_v58  ;;  %v456_v45 = vrot.slane %v446_v29, %v455_v33 }
  0x7e   :  { %v435_v46 = vadd.f32 %v427_v40, %v386_v16  ;;  %v533_v10 = vsub.s32 7, %v981_v31 }
  0x7f   :  { %v436_v32 = vadd.f32 %v428_v41, %v388_v36  ;;  %v448_v49 = vcombine.low %v433_v61, %v434_v42  ;;  %v463_v47 = vrot.slane %v447_v43, %v455_v33 }
  0x81   :  { %v449_v48 = vcombine.low %v435_v46, %v436_v32  ;;  %v470_v55 = vrot.slane %v448_v49, %v455_v33  ;;  %v478_v25 = vcombine.low %v456_v45, %v463_v47 }
  0x83   :  { %v477_v57 = vrot.slane %v449_v48, %v455_v33  ;;  %v486_v11 = vrot.slane %v478_v25, %v455_v33 }
  0x85   :  { %v479_v6 = vcombine.low %v470_v55, %v477_v57 }
  0x87   :  { %v493_v56 = vrot.slane %v479_v6, %v455_v33 }
  0x89   :  { %v494_v2 = vcombine.low %v486_v11, %v493_v56 }
  0x8b   :  { %v506_v19 = vrot.slane %v494_v2, %v505_v63  ;;  %v510_v3 = vrot.slane %v494_v2, %v509_v13  ;;  %v514_v21 = vrot.slane %v494_v2, %v513_v1  ;;  %v518_v9 = vrot.slane %v494_v2, %v517_v34 }
  0x8c   :  { %v522_v35 = vrot.slane %v494_v2, %v521_v53  ;;  %v526_v8 = vrot.slane %v494_v2, %v525_v17  ;;  %v530_v27 = vrot.slane %v494_v2, %v529_v60  ;;  %v534_v28 = vrot.slane %v494_v2, %v533_v10 }
  0x8d   :  { %v544_v33 = vsel %vm543_vm0, %v506_v19, 0.0  ;;  %v545_v59 = vsel %vm543_vm0, %v510_v3, 0.0  ;;  %v547_v7 = vsel %vm543_vm0, %v514_v21, 0.0  ;;  %v549_v23 = vsel %vm543_vm0, %v518_v9, 0.0 }
  0x8e   :  { %v546_v12 = vadd.f32 %v545_v59, %v544_v33  ;;  %v551_v22 = vsel %vm543_vm0, %v522_v35, 0.0  ;;  %v553_v30 = vsel %vm543_vm0, %v526_v8, 0.0  ;;  %v555_v37 = vsel %vm543_vm0, %v530_v27, 0.0 }
  0x8f   :  { %v557_v14 = vsel %vm543_vm0, %v534_v28, 0.0 }
  0x90   :  { %v548_v15 = vadd.f32 %v547_v7, %v546_v12 }
  0x92   :  { %v550_v16 = vadd.f32 %v549_v23, %v548_v15 }
  0x94   :  { %v552_v5 = vadd.f32 %v551_v22, %v550_v16 }
  0x96   :  { %v554_v62 = vadd.f32 %v553_v30, %v552_v5 }
  0x98   :  { %v556_v44 = vadd.f32 %v555_v37, %v554_v62 }
  0x9a   :  { %v558_v54 = vadd.f32 %v557_v14, %v556_v44 }
  0x9c   :  { %559 = vadd.xlane.f32.xlu0 %v558_v54 }
 0x125   :  { %v560_v31 = vpop.xlane.xlu0 %559 }
 0x126   :  { %v561_v18 = vrot.slane %v560_v31, 4 }
 0x128   :  { %v562_v50 = vadd.f32 %v561_v18, %v560_v31 }
 0x12a   :  { %v563_v0 = vrot.slane %v562_v50, 2 }
 0x12c   :  { %v564_v20 = vadd.f32 %v563_v0, %v562_v50 }
 0x12e   :  { %v565_v51 = vrot.slane %v564_v20, 1 }
 0x130   :  { %v566_v38 = vadd.f32 %v565_v51, %v564_v20 }
 0x132   :  { %588 = vpush %v566_v38 }
 0x163   :  { %s589_s19 = spop %588 }
 0x164   :  { %s568_s20 = smul.f32 0.0625, %s589_s19 }
 0x166   :  { %v569_v36 = vstv %s568_s20 }
 0x167   :  { %571 = vst.msk [vmem:[#allocation8] sm:$0x1] %vm570_vm1, %v569_v36 }
 0x168   :  { %725 = shalt.err (!%p722_p0)
}
 0x169   :  { %581 = dma.vmem_to_hbm [thread:$0]  %s579_s1, 16, %s1010_s2, [#allocation5]  }
 0x16a   :  { %738 = dma.done.wait [#allocation5], 16  }
 0x16b   :  { %739 = vsyncadd [#allocation5], 4294967280 }
 0x16c   :  { %585 = vsyncpa [#allocation4], 1 }
 0x16d   :  { %586 = vsyncpa [#allocation7], 1 }
 0x16e   :  { %587 = vsyncpa [#allocation5], 1 }

</bundles_post_ra>
